<compile_context>
chip_gen: v6e
topology: v6e:2x2x1
jax: 0.10.0
libtpu: 0.0.40
codegen_flags: <defaults>
</compile_context>

<pallas_src>
import jax
import jax.numpy as jnp
from jax.experimental import pallas as pl
from jax.experimental.pallas import tpu as pltpu

_LANE = 128
_SUBLANE = 8


def _kl_kernel(mu1_ref, lv1_ref, mu2_ref, lv2_ref, out_ref, acc_ref):
    s = pl.program_id(1)

    @pl.when(s == 0)
    def _init():
        acc_ref[...] = jnp.zeros_like(acc_ref)

    mu1 = mu1_ref[...].astype(jnp.float32)
    lv1 = lv1_ref[...].astype(jnp.float32)
    mu2 = mu2_ref[...].astype(jnp.float32)
    lv2 = lv2_ref[...].astype(jnp.float32)

    diff = mu1 - mu2
    # fraction = (exp(lv1) + diff^2) / exp(lv2)
    #          = exp(lv1 - lv2) + diff^2 * exp(-lv2)        (no reciprocal)
    term = (lv2 - lv1 - 1.0) + jnp.exp(lv1 - lv2) + diff * diff * jnp.exp(-lv2)

    # term: (groups_per_block, 8, 128). Fold onto the vreg-shaped accumulator
    # with VPU adds; the cross-lane reduce happens once, in the wrapper.
    acc_ref[...] += jnp.sum(term, axis=0)

    @pl.when(s == pl.num_programs(1) - 1)
    def _finalize():
        out_ref[...] = acc_ref[...].reshape(out_ref.shape)


def gaussian_kl_loss(mu1, logvar1, mu2, logvar2, *, block_rows=4096):
    """Pallas TPU implementation of GaussianKLLoss.forward. Returns a scalar."""
    assert mu1.shape == logvar1.shape == mu2.shape == logvar2.shape
    assert mu1.ndim == 2, "module semantics: sum over dim=1, mean over dim=0"
    n_batch, _ = mu1.shape
    total = mu1.size

    # Flattened layout: rows of 128 lanes, grouped by 8 sublanes (vreg tiles).
    rows = pl.cdiv(total, _LANE)
    rows = pl.cdiv(rows, _SUBLANE) * _SUBLANE
    block_rows = min(block_rows, rows)          # whole array in one step if small
    block_groups = block_rows // _SUBLANE       # block = (block_groups, 8, 128)

    total_blocks = pl.cdiv(rows, block_rows)
    num_chunks = 2 if total_blocks >= 4 else 1  # dual-TC split (v7x); harmless elsewhere
    steps = pl.cdiv(total_blocks, num_chunks)
    padded_groups = num_chunks * steps * block_groups
    pad = padded_groups * _SUBLANE * _LANE - total

    def _prep(x):
        x = x.reshape(-1)
        if pad:
            # Zero padding contributes exactly 0 to `term` (see kernel math).
            x = jnp.pad(x, (0, pad))
        return x.reshape(padded_groups, _SUBLANE, _LANE)

    args = [_prep(x) for x in (mu1, logvar1, mu2, logvar2)]

    in_spec = pl.BlockSpec(
        (block_groups, _SUBLANE, _LANE), lambda c, s: (c * steps + s, 0, 0))
    out_spec = pl.BlockSpec((1, _SUBLANE, _LANE), lambda c, s: (c, 0, 0))

    partial = pl.pallas_call(
        _kl_kernel,
        out_shape=jax.ShapeDtypeStruct((num_chunks, _SUBLANE, _LANE), jnp.float32),
        grid_spec=pltpu.PrefetchScalarGridSpec(
            num_scalar_prefetch=0,
            grid=(num_chunks, steps),
            in_specs=[in_spec, in_spec, in_spec, in_spec],
            out_specs=out_spec,
            scratch_shapes=[pltpu.VMEM((_SUBLANE, _LANE), jnp.float32)],
        ),
        compiler_params=pltpu.CompilerParams(
            dimension_semantics=("parallel", "arbitrary"),
            vmem_limit_bytes=48 * 1024 * 1024,
        ),
    )(*args)

    # Single cross-lane reduce + scaling; n_batch is the true batch size
    # (block shapes no longer carry it).
    return 0.5 * jnp.sum(partial) / jnp.float32(n_batch)


def _reference(mu1, logvar1, mu2, logvar2):
    numerator = jnp.exp(logvar1) + (mu1 - mu2) ** 2
    fraction = numerator / jnp.exp(logvar2)
    kl = 0.5 * jnp.sum(logvar2 - logvar1 + fraction - 1.0, axis=1)
    return jnp.mean(kl, axis=0)


if __name__ == "__main__":
    key = jax.random.PRNGKey(0)
    k1, k2, k3, k4 = jax.random.split(key, 4)
    N, D = 4, 256  # small shapes: batch=4, latent dim=256

    mu1 = jax.random.normal(k1, (N, D), dtype=jnp.float32)
    logvar1 = 0.1 * jax.random.normal(k2, (N, D), dtype=jnp.float32)
    mu2 = jax.random.normal(k3, (N, D), dtype=jnp.float32)
    logvar2 = 0.1 * jax.random.normal(k4, (N, D), dtype=jnp.float32)

    out = gaussian_kl_loss(mu1, logvar1, mu2, logvar2)
    jax.block_until_ready(out)

    ref = _reference(mu1, logvar1, mu2, logvar2)
    assert jnp.allclose(out, ref, rtol=1e-5, atol=1e-5), (out, ref)

    print("KERNEL_OK")
</pallas_src>

<mosaic_0001>
module attributes {stable_mosaic.version = 11 : i64} {
  func.func @_kl_kernel(%arg0: i32, %arg1: i32, %arg2: memref<1x8x128xf32, #tpu.memory_space<vmem>>, %arg3: memref<1x8x128xf32, #tpu.memory_space<vmem>>, %arg4: memref<1x8x128xf32, #tpu.memory_space<vmem>>, %arg5: memref<1x8x128xf32, #tpu.memory_space<vmem>>, %arg6: memref<1x8x128xf32, #tpu.memory_space<vmem>>, %arg7: memref<8x128xf32, #tpu.memory_space<vmem>>) attributes {dimension_semantics = [#tpu.dimension_semantics<parallel>, #tpu.dimension_semantics<arbitrary>], iteration_bounds = array<i64: 1, 1>, scalar_prefetch = 0 : i64, scratch_operands = 1 : i64, tpu.core_type = #tpu.core_type<tc>, window_params = [{transform_indices = @transform_0, window_bounds = array<i64: 1, 8, 128>}, {transform_indices = @transform_1, window_bounds = array<i64: 1, 8, 128>}, {transform_indices = @transform_2, window_bounds = array<i64: 1, 8, 128>}, {transform_indices = @transform_3, window_bounds = array<i64: 1, 8, 128>}, {transform_indices = @transform_4, window_bounds = array<i64: 1, 8, 128>}]} {
    %c0_i32 = arith.constant 0 : i32
    %0 = arith.cmpi eq, %arg1, %c0_i32 : i32
    %1 = arith.extui %0 : i1 to i32
    %c0_i32_0 = arith.constant 0 : i32
    %2 = arith.cmpi ne, %1, %c0_i32_0 : i32
    scf.if %2 {
      %cst_20 = arith.constant 0.000000e+00 : f32
      %27 = vector.broadcast %cst_20 : f32 to vector<8x128xf32>
      %c0_21 = arith.constant 0 : index
      %c0_22 = arith.constant 0 : index
      %28 = vector.load %arg7[%c0_21, %c0_22] : memref<8x128xf32, #tpu.memory_space<vmem>>, vector<8x128xf32>
      tpu.vector_store %arg7[%c0_21, %c0_22], %27 {strides = array<i32>} : memref<8x128xf32, #tpu.memory_space<vmem>>, vector<8x128xf32>,
    } else {
    }
    %c0 = arith.constant 0 : index
    %c0_1 = arith.constant 0 : index
    %c0_2 = arith.constant 0 : index
    %3 = vector.load %arg2[%c0, %c0_1, %c0_2] : memref<1x8x128xf32, #tpu.memory_space<vmem>>, vector<1x8x128xf32>
    %c0_3 = arith.constant 0 : index
    %c0_4 = arith.constant 0 : index
    %c0_5 = arith.constant 0 : index
    %4 = vector.load %arg3[%c0_3, %c0_4, %c0_5] : memref<1x8x128xf32, #tpu.memory_space<vmem>>, vector<1x8x128xf32>
    %c0_6 = arith.constant 0 : index
    %c0_7 = arith.constant 0 : index
    %c0_8 = arith.constant 0 : index
    %5 = vector.load %arg4[%c0_6, %c0_7, %c0_8] : memref<1x8x128xf32, #tpu.memory_space<vmem>>, vector<1x8x128xf32>
    %c0_9 = arith.constant 0 : index
    %c0_10 = arith.constant 0 : index
    %c0_11 = arith.constant 0 : index
    %6 = vector.load %arg5[%c0_9, %c0_10, %c0_11] : memref<1x8x128xf32, #tpu.memory_space<vmem>>, vector<1x8x128xf32>
    %7 = arith.subf %3, %5 : vector<1x8x128xf32>
    %8 = arith.subf %6, %4 : vector<1x8x128xf32>
    %cst = arith.constant 1.000000e+00 : f32
    %9 = vector.broadcast %cst : f32 to vector<1x8x128xf32>
    %10 = arith.subf %8, %9 : vector<1x8x128xf32>
    %11 = arith.subf %4, %6 : vector<1x8x128xf32>
    %12 = math.exp %11 : vector<1x8x128xf32>
    %13 = arith.addf %10, %12 : vector<1x8x128xf32>
    %14 = arith.mulf %7, %7 : vector<1x8x128xf32>
    %cst_12 = arith.constant 0.000000e+00 : f32
    %15 = vector.broadcast %cst_12 : f32 to vector<1x8x128xf32>
    %16 = arith.subf %15, %6 : vector<1x8x128xf32>
    %17 = math.exp %16 : vector<1x8x128xf32>
    %18 = arith.mulf %14, %17 : vector<1x8x128xf32>
    %19 = arith.addf %13, %18 : vector<1x8x128xf32>
    %c0_13 = arith.constant 0 : index
    %c0_14 = arith.constant 0 : index
    %20 = vector.load %arg7[%c0_13, %c0_14] : memref<8x128xf32, #tpu.memory_space<vmem>>, vector<8x128xf32>
    %cst_15 = arith.constant dense<0.000000e+00> : vector<8x128xf32>
    %21 = vector.multi_reduction <add>, %19, %cst_15 [0] : vector<1x8x128xf32> to vector<8x128xf32>
    %22 = arith.addf %20, %21 : vector<8x128xf32>
    %c0_16 = arith.constant 0 : index
    %c0_17 = arith.constant 0 : index
    %23 = vector.load %arg7[%c0_16, %c0_17] : memref<8x128xf32, #tpu.memory_space<vmem>>, vector<8x128xf32>
    tpu.vector_store %arg7[%c0_16, %c0_17], %22 {strides = array<i32>} : memref<8x128xf32, #tpu.memory_space<vmem>>, vector<8x128xf32>,
    %c0_i32_18 = arith.constant 0 : i32
    %24 = arith.cmpi eq, %arg1, %c0_i32_18 : i32
    %25 = arith.extui %24 : i1 to i32
    %c0_i32_19 = arith.constant 0 : i32
    %26 = arith.cmpi ne, %25, %c0_i32_19 : i32
    scf.if %26 {
      %c0_20 = arith.constant 0 : index
      %c0_21 = arith.constant 0 : index
      %27 = vector.load %arg7[%c0_20, %c0_21] : memref<8x128xf32, #tpu.memory_space<vmem>>, vector<8x128xf32>
      %28 = vector.shape_cast %27 : vector<8x128xf32> to vector<1x8x128xf32>
      %c0_22 = arith.constant 0 : index
      %c0_23 = arith.constant 0 : index
      %c0_24 = arith.constant 0 : index
      %29 = vector.load %arg6[%c0_22, %c0_23, %c0_24] : memref<1x8x128xf32, #tpu.memory_space<vmem>>, vector<1x8x128xf32>
      tpu.vector_store %arg6[%c0_22, %c0_23, %c0_24], %28 {strides = array<i32>} : memref<1x8x128xf32, #tpu.memory_space<vmem>>, vector<1x8x128xf32>,
    } else {
    }
    return
  }
  func.func @transform_0(%arg0: i32, %arg1: i32) -> (i32, i32, i32) {
    %c1_i32 = arith.constant 1 : i32
    %0 = arith.muli %arg0, %c1_i32 : i32
    %1 = arith.addi %0, %arg1 : i32
    %c0_i32 = arith.constant 0 : i32
    %c0_i32_0 = arith.constant 0 : i32
    %c0_i32_1 = arith.constant 0 : i32
    return %1, %c0_i32, %c0_i32_0 : i32, i32, i32
  }
  func.func @transform_1(%arg0: i32, %arg1: i32) -> (i32, i32, i32) {
    %c1_i32 = arith.constant 1 : i32
    %0 = arith.muli %arg0, %c1_i32 : i32
    %1 = arith.addi %0, %arg1 : i32
    %c0_i32 = arith.constant 0 : i32
    %c0_i32_0 = arith.constant 0 : i32
    %c0_i32_1 = arith.constant 0 : i32
    return %1, %c0_i32, %c0_i32_0 : i32, i32, i32
  }
  func.func @transform_2(%arg0: i32, %arg1: i32) -> (i32, i32, i32) {
    %c1_i32 = arith.constant 1 : i32
    %0 = arith.muli %arg0, %c1_i32 : i32
    %1 = arith.addi %0, %arg1 : i32
    %c0_i32 = arith.constant 0 : i32
    %c0_i32_0 = arith.constant 0 : i32
    %c0_i32_1 = arith.constant 0 : i32
    return %1, %c0_i32, %c0_i32_0 : i32, i32, i32
  }
  func.func @transform_3(%arg0: i32, %arg1: i32) -> (i32, i32, i32) {
    %c1_i32 = arith.constant 1 : i32
    %0 = arith.muli %arg0, %c1_i32 : i32
    %1 = arith.addi %0, %arg1 : i32
    %c0_i32 = arith.constant 0 : i32
    %c0_i32_0 = arith.constant 0 : i32
    %c0_i32_1 = arith.constant 0 : i32
    return %1, %c0_i32, %c0_i32_0 : i32, i32, i32
  }
  func.func @transform_4(%arg0: i32, %arg1: i32) -> (i32, i32, i32) {
    %c0_i32 = arith.constant 0 : i32
    %c0_i32_0 = arith.constant 0 : i32
    %c0_i32_1 = arith.constant 0 : i32
    return %arg0, %c0_i32, %c0_i32_0 : i32, i32, i32
  }
}

</mosaic_0001>

<bundles_post_ra>
// kernel: tpu_custom_call.1
= control target key start
LH: loop header
LB: loop body
LE: loop exit
PB: predicated region body
PF: predicated region fallthrough
CT: control target
= control target key end

     0   :  { %9 = vsyncpa [#allocation4], 0  ;;  %s292_s0 = inlined_call_operand.hbm [shape: f32[1,8,128], index: 0, kind: input, shape index: {}]   ;;  %s293_s1 = inlined_call_operand.hbm [shape: f32[1,8,128], index: 1, kind: input, shape index: {}]   ;;  %s294_s2 = inlined_call_operand.hbm [shape: f32[1,8,128], index: 2, kind: input, shape index: {}]   ;;  %s295_s3 = inlined_call_operand.hbm [shape: f32[1,8,128], index: 3, kind: input, shape index: {}]   ;;  %s296_s4 = inlined_call_operand.hbm [shape: f32[1,8,128], index: 4, kind: output, shape index: {}]  }
   0x1   :  { %10 = vsyncpa [#allocation7], 0 }
   0x2   :  { %11 = vsyncpa [#allocation10], 0 }
   0x3   :  { %12 = vsyncpa [#allocation5], 0  ;;  %s247_s15 = smov [#allocation6]   ;;  %s248_s17 = smov [#allocation3]  }
   0x4   :  { %s35_s16 = sshll.u32 %s247_s15, 4  ;;  %s22_s18 = sshll.u32 %s248_s17, 4  ;;  %s36_s16 = int_to_ptr.vmem [resolvable:$true] %s35_s16  ;;  %s23_s18 = int_to_ptr.vmem [resolvable:$true] %s22_s18 }
   0x5   :  { %s147_s19 = scalar_lea.vmem %s36_s16, 128  ;;  %p152_p1 = scmp.lt.s32.totalorder %s36_s16, %s36_s16 }
   0x6   :  { %p148_p0 = scmp.ne.s32.totalorder %s36_s16, %s147_s19  ;;  %p153_p2 = scmp.lt.s32.totalorder %s147_s19, %s147_s19 }
   0x8   :  { %p154_p3 = por %p153_p2, %p152_p1 }
   0xa   :  { %p155_p4 = pnand %p154_p3, %p148_p0 }
   0xc   :  { %158 = shalt.err (!%p155_p4)
}
   0xd   :  { %38 = dma.hbm_to_vmem [thread:$0]  %s293_s1, 128, %s36_s16, [#allocation7]  }
   0xe   :  { %s167_s22 = scalar_lea.vmem %s23_s18, 128  ;;  %p172_p6 = scmp.lt.s32.totalorder %s23_s18, %s23_s18 }
   0xf   :  { %p168_p5 = scmp.ne.s32.totalorder %s23_s18, %s167_s22  ;;  %p173_p7 = scmp.lt.s32.totalorder %s167_s22, %s167_s22 }
  0x11   :  { %p174_p8 = por %p173_p7, %p172_p6 }
  0x13   :  { %p175_p9 = pnand %p174_p8, %p168_p5 }
  0x15   :  { %178 = shalt.err (!%p175_p9)
}
  0x16   :  { %25 = dma.hbm_to_vmem [thread:$0]  %s292_s0, 128, %s23_s18, [#allocation4]  }
  0x17   :  { %s249_s25 = smov [#allocation8]   ;;  %s250_s27 = smov [#allocation9]  }
  0x18   :  { %s48_s26 = sshll.u32 %s249_s25, 4  ;;  %s61_s28 = sshll.u32 %s250_s27, 4  ;;  %s49_s26 = int_to_ptr.vmem [resolvable:$true] %s48_s26  ;;  %s62_s28 = int_to_ptr.vmem [resolvable:$true] %s61_s28 }
  0x19   :  { %s187_s29 = scalar_lea.vmem %s49_s26, 128  ;;  %p192_p11 = scmp.lt.s32.totalorder %s49_s26, %s49_s26 }
  0x1a   :  { %p188_p10 = scmp.ne.s32.totalorder %s49_s26, %s187_s29  ;;  %p193_p12 = scmp.lt.s32.totalorder %s187_s29, %s187_s29 }
  0x1c   :  { %p194_p13 = por %p193_p12, %p192_p11 }
  0x1e   :  { %p195_p0 = pnand %p194_p13, %p188_p10 }
  0x20   :  { %198 = shalt.err (!%p195_p0)
}
  0x21   :  { %51 = dma.hbm_to_vmem [thread:$0]  %s294_s2, 128, %s49_s26, [#allocation7]  }
  0x22   :  { %s207_s5 = scalar_lea.vmem %s62_s28, 128  ;;  %p212_p2 = scmp.lt.s32.totalorder %s62_s28, %s62_s28 }
  0x23   :  { %p208_p1 = scmp.ne.s32.totalorder %s62_s28, %s207_s5  ;;  %p213_p3 = scmp.lt.s32.totalorder %s207_s5, %s207_s5 }
  0x25   :  { %p214_p4 = por %p213_p3, %p212_p2 }
  0x27   :  { %p215_p5 = pnand %p214_p4, %p208_p1 }
  0x29   :  { %218 = shalt.err (!%p215_p5)
}
  0x2a   :  { %64 = dma.hbm_to_vmem [thread:$0]  %s295_s3, 128, %s62_s28, [#allocation10]  }
  0x2b   :  { %239 = dma.done.wait [#allocation4], 128  }
  0x2c   :  { %240 = vsyncadd [#allocation4], 4294967168 }
  0x2d   :  { %241 = dma.done.wait [#allocation7], 256  }
  0x2e   :  { %242 = vsyncadd [#allocation7], 4294967040 }
  0x2f   :  { %243 = dma.done.wait [#allocation10], 128  }
  0x30   :  { %244 = vsyncadd [#allocation10], 4294967168  ;;  %v87_v0 = vld [vmem:[#allocation6] sm:$0xff]  ;;  %v89_v1 = vld [vmem:[#allocation9] sm:$0xff]  ;;  %s251_s2 = smov [#allocation11]  }
  0x31   :  { %v93_v2 = vsub.f32 %v87_v0, %v89_v1  ;;  %v98_v3 = vsub.f32 0.0, %v89_v1  ;;  %v86_v6 = vld [vmem:[#allocation3] sm:$0xff]  ;;  %v88_v7 = vld [vmem:[#allocation8] sm:$0xff]  ;;  %v91_v8 = vsub.f32 %v89_v1, %v87_v0  ;;  %s118_s3 = sshll.u32 %s251_s2, 4  ;;  %s119_s3 = int_to_ptr.vmem [resolvable:$true] %s118_s3 }
  0x32   :  { %v90_v9 = vsub.f32 %v86_v6, %v88_v7  ;;  %s219_s7 = scalar_lea.vmem %s119_s3, 128  ;;  %p224_p7 = scmp.lt.s32.totalorder %s119_s3, %s119_s3 }
  0x33   :  { %v94_v4 = vmul.f32 1.442695, %v93_v2  ;;  %v99_v5 = vmul.f32 1.442695, %v98_v3  ;;  %v129_v10 = vadd.f32 -1.0, %v91_v8  ;;  %p220_p6 = scmp.ne.s32.totalorder %s119_s3, %s219_s7  ;;  %p225_p8 = scmp.lt.s32.totalorder %s219_s7, %s219_s7 }
  0x34   :  { %v97_v11 = vmul.f32 %v90_v9, %v90_v9 }
  0x35   :  { %135 = vpow2.f32 %v94_v4  ;;  %p226_p9 = por %p225_p8, %p224_p7 }
  0x36   :  { %137 = vpow2.f32 %v99_v5 }
  0x37   :  { %p227_p10 = pnand %p226_p9, %p220_p6 }
  0x42   :  { %v136_v12 = vpop.eup %135 }
  0x43   :  { %v138_v13 = vpop.eup %137  ;;  %v96_v14 = vadd.f32 %v136_v12, %v129_v10 }
  0x44   :  { %v101_v15 = vmul.f32 %v138_v13, %v97_v11 }
  0x46   :  { %v102_v16 = vadd.f32 %v101_v15, %v96_v14 }
  0x48   :  { %111 = vst [vmem:[#allocation11] sm:$0xff] %v102_v16 }
  0x49   :  { %230 = shalt.err (!%p227_p10)
}
  0x4a   :  { %121 = dma.vmem_to_hbm [thread:$0]  %s119_s3, 128, %s296_s4, [#allocation5]  }
  0x4b   :  { %245 = dma.done.wait [#allocation5], 128  }
  0x4c   :  { %246 = vsyncadd [#allocation5], 4294967168 }
  0x4d   :  { %125 = vsyncpa [#allocation4], 1 }
  0x4e   :  { %126 = vsyncpa [#allocation7], 1 }
  0x4f   :  { %127 = vsyncpa [#allocation10], 1 }
  0x50   :  { %128 = vsyncpa [#allocation5], 1 }

</bundles_post_ra>
